<compile_context>
chip_gen: v5e
topology: v5e:2x2
jax: 0.10.0
libtpu: 0.0.40
codegen_flags: <defaults>
</compile_context>

<pallas_src>
import functools

import jax
import jax.numpy as jnp
from jax.experimental import pallas as pl
from jax.experimental.pallas import tpu as pltpu


def _se_block_kernel(x_ref, w1t_ref, w2t_ref, o_ref, *, channels_last):
    # x_ref: (B_BLK, C, HW) if not channels_last, else (B_BLK, HW, C)
    x = x_ref[...]                                   # keep native dtype for the big tile
    reduce_axis = 1 if channels_last else 2

    # Global average pool over spatial positions, f32 accumulation -> (B_BLK, C)
    pooled = jnp.mean(x, axis=reduce_axis, dtype=jnp.float32)

    # fc1 (C -> C//r) + ReLU, batched over the tile. Weights pre-transposed in wrapper.
    h = jnp.dot(pooled, w1t_ref[...], preferred_element_type=jnp.float32)  # (B_BLK, C//r)
    h = jnp.maximum(h, 0.0)

    # fc2 (C//r -> C) + sigmoid.
    y = jnp.dot(h, w2t_ref[...], preferred_element_type=jnp.float32)       # (B_BLK, C)

    # out = x + x * sigmoid(y)  ==  x * (1 + sigmoid(y)): one multiply on the big tile.
    scale = (1.0 + jax.nn.sigmoid(y)).astype(x.dtype)                      # (B_BLK, C)
    if channels_last:
        scale = scale[:, None, :]     # broadcast over HW (sublane axis)
    else:
        scale = scale[:, :, None]     # broadcast over HW (lane axis)

    o_ref[...] = (x * scale).astype(o_ref.dtype)


def se_block(x, w1, w2, *, target_tile_bytes=2 * 1024 * 1024):
    """SEBlock forward.

    x : (B, C, H, W)
    w1: (C//r, C)   -- PyTorch nn.Linear orientation (out, in), no bias
    w2: (C, C//r)
    """
    b, c, h, w = x.shape
    hw = h * w
    cr = w1.shape[0]
    itemsize = jnp.dtype(x.dtype).itemsize

    # Lane-dense layout: prefer a 128-multiple on the last (lane) axis.
    channels_last = (hw % 128 != 0) and (c % 128 == 0)
    if channels_last:
        x_flat = x.reshape(b, c, hw).transpose(0, 2, 1)   # (B, HW, C)
        blk_tail = (hw, c)
    else:
        x_flat = x.reshape(b, c, hw)                      # (B, C, HW)
        blk_tail = (c, hw)

    # Batch-tile size: aim for ~target_tile_bytes of x per grid step
    # (conservative enough for v7x's smaller 64 MiB VMEM as well).
    per_batch_bytes = c * hw * itemsize
    b_blk = max(1, min(b, target_tile_bytes // per_batch_bytes))
    while b % b_blk != 0:           # keep full blocks (no padded remainder tiles)
        b_blk -= 1
    grid = (b // b_blk,)

    # Pre-transposed weights so both FCs are lane-dense (B_BLK, K) @ (K, N).
    w1t = jnp.transpose(w1)         # (C, C//r)
    w2t = jnp.transpose(w2)         # (C//r, C)

    tile_bytes = b_blk * per_batch_bytes
    weight_bytes = (w1.size + w2.size) * jnp.dtype(w1.dtype).itemsize
    # 2x (double buffer) for input + output tiles, 2x weights, plus headroom.
    vmem_limit = int(min(4 * tile_bytes + 2 * weight_bytes + (8 << 20), 48 << 20))

    cost = pl.CostEstimate(
        flops=4 * b * c * cr + 2 * b * c * hw,
        transcendentals=b * c,                      # sigmoid
        bytes_accessed=2 * b * c * hw * itemsize + weight_bytes,
    )

    kernel = functools.partial(_se_block_kernel, channels_last=channels_last)

    out_flat = pl.pallas_call(
        kernel,
        out_shape=jax.ShapeDtypeStruct(x_flat.shape, x.dtype),
        grid_spec=pltpu.PrefetchScalarGridSpec(
            num_scalar_prefetch=0,
            grid=grid,
            in_specs=[
                pl.BlockSpec((b_blk,) + blk_tail, lambda i: (i, 0, 0)),  # x tile
                pl.BlockSpec((c, cr), lambda i: (0, 0)),                 # w1.T (whole)
                pl.BlockSpec((cr, c), lambda i: (0, 0)),                 # w2.T (whole)
            ],
            out_specs=pl.BlockSpec((b_blk,) + blk_tail, lambda i: (i, 0, 0)),
        ),
        compiler_params=pltpu.CompilerParams(
            dimension_semantics=("parallel",),       # lets v7x split batch across 2 TCs
            vmem_limit_bytes=vmem_limit,
        ),
        cost_estimate=cost,
    )(x_flat, w1t, w2t)

    if channels_last:
        out = out_flat.transpose(0, 2, 1).reshape(b, c, h, w)
    else:
        out = out_flat.reshape(b, c, h, w)
    return out


def se_block_ref(x, w1, w2):
    """Plain-JAX reference mirroring the PyTorch forward."""
    b, c, h, w = x.shape
    y = jnp.mean(x, axis=(2, 3), dtype=jnp.float32)                       # (B, C)
    y = jnp.maximum(jnp.dot(y, w1.T, precision="highest"), 0.0)           # Linear + ReLU
    y = jax.nn.sigmoid(jnp.dot(y, w2.T, precision="highest"))             # Linear + Sigmoid
    y = y.reshape(b, c, 1, 1).astype(x.dtype)
    return x + x * y


if __name__ == "__main__":
    # Config 1: channels=32, reduction=16 -> hidden=2; HW=256 (lane-dense as-is).
    B, C, H, W = 2, 32, 16, 16
    REDUCTION = 16
    CR = C // REDUCTION

    key = jax.random.PRNGKey(0)
    kx, k1, k2 = jax.random.split(key, 3)
    x = jax.random.normal(kx, (B, C, H, W), dtype=jnp.float32)
    w1 = jax.random.normal(k1, (CR, C), dtype=jnp.float32) * 0.1
    w2 = jax.random.normal(k2, (C, CR), dtype=jnp.float32) * 0.1

    out = jax.block_until_ready(se_block(x, w1, w2))
    ref = se_block_ref(x, w1, w2)
    assert out.shape == (B, C, H, W)
    assert jnp.allclose(out, ref, atol=2e-4, rtol=2e-4), "mismatch vs reference (config 1)"

    # Config 2: HW=49 not a multiple of 128, C=128 -> exercises channels-last path.
    B2, C2, H2, W2, R2 = 2, 128, 7, 7, 16
    CR2 = C2 // R2
    kx2, k3, k4 = jax.random.split(jax.random.PRNGKey(1), 3)
    x2 = jax.random.normal(kx2, (B2, C2, H2, W2), dtype=jnp.float32)
    w1b = jax.random.normal(k3, (CR2, C2), dtype=jnp.float32) * 0.1
    w2b = jax.random.normal(k4, (C2, CR2), dtype=jnp.float32) * 0.1

    out2 = jax.block_until_ready(se_block(x2, w1b, w2b))
    ref2 = se_block_ref(x2, w1b, w2b)
    assert out2.shape == (B2, C2, H2, W2)
    assert jnp.allclose(out2, ref2, atol=2e-4, rtol=2e-4), "mismatch vs reference (config 2)"

    print("KERNEL_OK")
</pallas_src>

<mosaic_0001>
module attributes {stable_mosaic.version = 11 : i64} {
  func.func @_se_block_kernel(%arg0: i32, %arg1: memref<2x32x256xf32, #tpu.memory_space<vmem>>, %arg2: memref<32x2xf32, #tpu.memory_space<vmem>>, %arg3: memref<2x32xf32, #tpu.memory_space<vmem>>, %arg4: memref<2x32x256xf32, #tpu.memory_space<vmem>>) attributes {dimension_semantics = [#tpu.dimension_semantics<parallel>], iteration_bounds = array<i64: 1>, scalar_prefetch = 0 : i64, scratch_operands = 0 : i64, tpu.core_type = #tpu.core_type<tc>, window_params = [{transform_indices = @transform_0, window_bounds = array<i64: 2, 32, 256>}, {pipeline_mode = #tpu.pipeline_mode<synchronous>, transform_indices = @transform_1, window_bounds = array<i64: 32, 2>}, {pipeline_mode = #tpu.pipeline_mode<synchronous>, transform_indices = @transform_2, window_bounds = array<i64: 2, 32>}, {transform_indices = @transform_3, window_bounds = array<i64: 2, 32, 256>}]} {
    %c0 = arith.constant 0 : index
    %c0_0 = arith.constant 0 : index
    %c0_1 = arith.constant 0 : index
    %0 = vector.load %arg1[%c0, %c0_0, %c0_1] : memref<2x32x256xf32, #tpu.memory_space<vmem>>, vector<2x32x256xf32>
    %cst = arith.constant dense<0.000000e+00> : vector<2x32xf32>
    %1 = vector.multi_reduction <add>, %0, %cst [2] : vector<2x32x256xf32> to vector<2x32xf32>
    %cst_2 = arith.constant 2.560000e+02 : f32
    %2 = vector.broadcast %cst_2 : f32 to vector<2x32xf32>
    %3 = arith.divf %1, %2 : vector<2x32xf32>
    %c0_3 = arith.constant 0 : index
    %c0_4 = arith.constant 0 : index
    %4 = vector.load %arg2[%c0_3, %c0_4] : memref<32x2xf32, #tpu.memory_space<vmem>>, vector<32x2xf32>
    %cst_5 = arith.constant dense<0.000000e+00> : vector<2x2xf32>
    %5 = tpu.matmul %3, %4, %cst_5 {dimension_numbers = #tpu.dot_dimension_numbers<[1], [0], [0], [1], [0, 0, 1, 1], [], []>} : vector<2x32xf32>, vector<32x2xf32>, vector<2x2xf32> -> vector<2x2xf32>
    %cst_6 = arith.constant 0.000000e+00 : f32
    %6 = vector.broadcast %cst_6 : f32 to vector<2x2xf32>
    %7 = arith.maximumf %5, %6 : vector<2x2xf32>
    %c0_7 = arith.constant 0 : index
    %c0_8 = arith.constant 0 : index
    %8 = vector.load %arg3[%c0_7, %c0_8] : memref<2x32xf32, #tpu.memory_space<vmem>>, vector<2x32xf32>
    %cst_9 = arith.constant dense<0.000000e+00> : vector<2x32xf32>
    %9 = tpu.matmul %7, %8, %cst_9 {dimension_numbers = #tpu.dot_dimension_numbers<[1], [0], [0], [1], [0, 0, 1, 1], [], []>} : vector<2x2xf32>, vector<2x32xf32>, vector<2x32xf32> -> vector<2x32xf32>
    %10 = arith.negf %9 : vector<2x32xf32>
    %11 = math.exp %10 : vector<2x32xf32>
    %cst_10 = arith.constant 1.000000e+00 : f32
    %12 = vector.broadcast %cst_10 : f32 to vector<2x32xf32>
    %13 = arith.addf %12, %11 : vector<2x32xf32>
    %14 = arith.divf %12, %13 : vector<2x32xf32>
    %cst_11 = arith.constant 1.000000e+00 : f32
    %15 = vector.broadcast %cst_11 : f32 to vector<2x32xf32>
    %16 = arith.addf %15, %14 : vector<2x32xf32>
    %17 = vector.shape_cast %16 : vector<2x32xf32> to vector<2x32x1xf32>
    %18 = vector.broadcast %17 : vector<2x32x1xf32> to vector<2x32x256xf32>
    %19 = arith.mulf %0, %18 : vector<2x32x256xf32>
    %c0_12 = arith.constant 0 : index
    %c0_13 = arith.constant 0 : index
    %c0_14 = arith.constant 0 : index
    %20 = vector.load %arg4[%c0_12, %c0_13, %c0_14] : memref<2x32x256xf32, #tpu.memory_space<vmem>>, vector<2x32x256xf32>
    tpu.vector_store %arg4[%c0_12, %c0_13, %c0_14], %19 {strides = array<i32>} : memref<2x32x256xf32, #tpu.memory_space<vmem>>, vector<2x32x256xf32>,
    return
  }
  func.func @transform_0(%arg0: i32) -> (i32, i32, i32) {
    %c0_i32 = arith.constant 0 : i32
    %c0_i32_0 = arith.constant 0 : i32
    %c0_i32_1 = arith.constant 0 : i32
    return %arg0, %c0_i32, %c0_i32_0 : i32, i32, i32
  }
  func.func @transform_1(%arg0: i32) -> (i32, i32) {
    %c0_i32 = arith.constant 0 : i32
    %c0_i32_0 = arith.constant 0 : i32
    %c0_i32_1 = arith.constant 0 : i32
    return %c0_i32, %c0_i32_0 : i32, i32
  }
  func.func @transform_2(%arg0: i32) -> (i32, i32) {
    %c0_i32 = arith.constant 0 : i32
    %c0_i32_0 = arith.constant 0 : i32
    %c0_i32_1 = arith.constant 0 : i32
    return %c0_i32, %c0_i32_0 : i32, i32
  }
  func.func @transform_3(%arg0: i32) -> (i32, i32, i32) {
    %c0_i32 = arith.constant 0 : i32
    %c0_i32_0 = arith.constant 0 : i32
    %c0_i32_1 = arith.constant 0 : i32
    return %arg0, %c0_i32, %c0_i32_0 : i32, i32, i32
  }
}

</mosaic_0001>

<bundles_post_ra>
// kernel: tpu_custom_call.1
= control target key start
LH: loop header
LB: loop body
LE: loop exit
PB: predicated region body
PF: predicated region fallthrough
CT: control target
= control target key end

     0   :  { %8 = vsyncpa [#allocation3], 0  ;;  %s488_s0 = inlined_call_operand.hbm [shape: f32[2,32,256], index: 0, kind: input, shape index: {}]   ;;  %s489_s1 = inlined_call_operand.vmem [shape: f32[32,2], index: 1, kind: input, shape index: {}]   ;;  %s490_s2 = inlined_call_operand.vmem [shape: f32[2,32], index: 2, kind: input, shape index: {}]   ;;  %s491_s3 = inlined_call_operand.hbm [shape: f32[2,32,256], index: 3, kind: output, shape index: {}]  }
   0x1   :  { %9 = vsyncpa [#allocation4], 0  ;;  %s14_s14 = sshll.u32 %s488_s0, 4  ;;  %s372_s15 = smov [#allocation2]   ;;  %s15_s14 = int_to_ptr.hbm [resolvable:$true] %s14_s14 }
   0x2   :  { %s16_s16 = sshll.u32 %s372_s15, 4  ;;  %s373_s17 = smov 256   ;;  %s17_s16 = int_to_ptr.vmem [resolvable:$true] %s16_s16 }
   0x3   :  { %s374_s18 = smov 16  }
   0x4   :  { %22 = dma.hbm_to_vmem [thread:$0]  %s15_s14, 2048, %s17_s16, [#allocation3], %s373_s17, %s373_s17, %s374_s18  }
   0x5   :  { %368 = dma.done.wait [#allocation3], 2048  }
   0x6   :  { %369 = vsyncadd [#allocation3], 4294965248  ;;  %v403_v0 = vld [vmem:[#allocation2 + $0x40] sm:$0xff]  ;;  %v405_v1 = vld [vmem:[#allocation2 + $0x48] sm:$0xff]  ;;  %v375_v25 = vmov 256.0   ;;  %v98_v36 = vlaneseq  ;;  %vm103_vm1 = vcmask 130112  }
   0x7   :  { %v407_v2 = vld [vmem:[#allocation2] sm:$0xff]  ;;  %v59_v3 = vadd.f32 %v405_v1, %v403_v0  ;;  %v411_v4 = vld [vmem:[#allocation2 + $0x8] sm:$0xff]  ;;  %v421_v9 = vld [vmem:[#allocation2 + $0x50] sm:$0xff]  ;;  %314 = vrcp.f32 %v375_v25  ;;  %vm107_vm2 = vcmask 195712   ;;  %vm111_vm3 = vcmask 261312   ;;  %s283_s30 = sshll.u32 %s491_s3, 4  ;;  %s284_s30 = int_to_ptr.hbm [resolvable:$true] %s283_s30 }
   0x8   :  { %v413_v5 = vld [vmem:[#allocation2 + $0x20] sm:$0xff]  ;;  %v415_v6 = vld [vmem:[#allocation2 + $0x28] sm:$0xff]  ;;  %v47_v7 = vadd.f32 %v411_v4, %v407_v2  ;;  %v423_v10 = vld [vmem:[#allocation2 + $0x58] sm:$0xff]  ;;  %v99_v38 = vand.u32 127, %v98_v36  ;;  %vm120_vm4 = vcmask 1041409   ;;  %vm122_vm5 = vcmask 261120  }
   0x9   :  { %v53_v8 = vadd.f32 %v415_v6, %v413_v5  ;;  %60 = vadd.xlane.f32.xlu1 %v59_v3  ;;  %v425_v11 = vld [vmem:[#allocation2 + $0x10] sm:$0xff]  ;;  %v427_v12 = vld [vmem:[#allocation2 + $0x18] sm:$0xff]  ;;  %v429_v13 = vld [vmem:[#allocation2 + $0x60] sm:$0xff]  ;;  %v62_v15 = vadd.f32 %v423_v10, %v421_v9  ;;  %vm151_vm6 = vcmask 1041408   ;;  %vm147_vm7 = vcmask 15360  }
   0xa   :  { %48 = vadd.xlane.f32.xlu0 %v47_v7  ;;  %v431_v14 = vld [vmem:[#allocation2 + $0x68] sm:$0xff]  ;;  %v50_v16 = vadd.f32 %v427_v12, %v425_v11  ;;  %v439_v18 = vld [vmem:[#allocation2 + $0x70] sm:$0xff]  ;;  %v441_v19 = vld [vmem:[#allocation2 + $0x78] sm:$0xff]  ;;  %v101_v41 = vadd.s32 4294967288, %v99_v38  ;;  %v105_v50 = vadd.s32 4294967280, %v99_v38  ;;  %v109_v54 = vadd.s32 4294967272, %v99_v38 }
   0xb   :  { %54 = vadd.xlane.f32.xlu2 %v53_v8  ;;  %v65_v17 = vadd.f32 %v431_v14, %v429_v13  ;;  %v443_v20 = vld [vmem:[#allocation2 + $0x30] sm:$0xff]  ;;  %v445_v21 = vld [vmem:[#allocation2 + $0x38] sm:$0xff]  ;;  %v68_v22 = vadd.f32 %v441_v19, %v439_v18  ;;  %v87_v27 = vld [vmem:[%s489_s1 + $0x8] sm:$0xff] }
   0xc   :  { %v56_v23 = vadd.f32 %v445_v21, %v443_v20  ;;  %v89_v24 = vld [vmem:[%s489_s1 + $0x18] sm:$0xff]  ;;  %v88_v26 = vld [vmem:[%s489_s1 + $0x10] sm:$0xff]  ;;  %v86_v28 = vld [vmem:[%s489_s1] sm:$0xff] }
   0xd   :  { %137 = vmatpush.msra.mxu0 %v89_v24  ;;  %v315_v29 = vpop.eup %314 }
   0xe   :  { %v72_v30 = vmul.f32 256.0, %v315_v29  ;;  %vm76_vm0 = vweird.f32 %v315_v29 }
   0xf   :  { %138 = vmatpush.msra.mxu0 %v88_v26  ;;  %v197_v26 = vshrl.u32 %v98_v36, 7 }
  0x10   :  { %v73_v31 = vsub.f32 1.0, %v72_v30 }
  0x11   :  { %63 = vadd.xlane.f32.xlu1 %v62_v15  ;;  %139 = vmatpush.msra.mxu0 %v87_v27  ;;  %v210_v27 = vadd.s32 16, %v197_v26 }
  0x12   :  { %51 = vadd.xlane.f32.xlu0 %v50_v16  ;;  %v74_v32 = vmul.f32 %v315_v29, %v73_v31  ;;  %305 = vset.pattern.permute.xlu2 %v197_v26 }
  0x13   :  { %66 = vadd.xlane.f32.xlu2 %v65_v17  ;;  %140 = vmatpush.msra.mxu0 %v86_v28  ;;  %v204_v28 = vadd.s32 8, %v197_v26 }
  0x14   :  { %v75_v37 = vadd.f32 %v315_v29, %v74_v32  ;;  %307 = vset.pattern.permute.xlu1 %v210_v27 }
  0x15   :  { %306 = vset.pattern.permute.xlu0 %v204_v28 }
  0x16   :  { %v77_v39 = vsel %vm76_vm0, %v315_v29, %v75_v37 }
  0x19   :  { %69 = vadd.xlane.f32.xlu1 %v68_v22 }
  0x1a   :  { %57 = vadd.xlane.f32.xlu0 %v56_v23  ;;  %v146_v23 = vld [vmem:[%s490_s2] sm:$0x3]  ;;  %s376_s2 = smov [#allocation5]  }
  0x1b   :  { %297 = vmatpush.msk.msra.mxu1 %vm151_vm6, %v146_v23  ;;  %s281_s27 = sshll.u32 %s376_s2, 4  ;;  %s282_s27 = int_to_ptr.vmem [resolvable:$true] %s281_s27 }
  0x7c   :  { %v61_v33 = vpop.xlane.xlu1 %60 }
  0x7d   :  { %v49_v34 = vpop.xlane.xlu0 %48  ;;  %v82_v46 = vmul.f32 %v77_v39, %v61_v33 }
  0x7e   :  { %v55_v35 = vpop.xlane.xlu2 %54  ;;  %v78_v47 = vmul.f32 %v77_v39, %v49_v34 }
  0x7f   :  { %v113_v52 = vperm.slane %v82_v46, %v99_v38  ;;  %v80_v53 = vmul.f32 %v77_v39, %v55_v35 }
  0x80   :  { %v100_v55 = vperm.slane %v78_v47, %v99_v38 }
  0x81   :  { %v106_v63 = vperm.slane %v80_v53, %v105_v50 }
  0x84   :  { %v64_v40 = vpop.xlane.xlu1 %63 }
  0x85   :  { %v83_v42 = vmul.f32 %v77_v39, %v64_v40  ;;  %v52_v43 = vpop.xlane.xlu0 %51 }
  0x86   :  { %v67_v44 = vpop.xlane.xlu2 %66  ;;  %v79_v45 = vmul.f32 %v77_v39, %v52_v43 }
  0x87   :  { %v84_v48 = vmul.f32 %v77_v39, %v67_v44  ;;  %v114_v49 = vperm.slane %v83_v42, %v101_v41 }
  0x88   :  { %v102_v51 = vperm.slane %v79_v45, %v101_v41  ;;  %v216_v45 = vadd.s32 24, %v197_v26 }
  0x89   :  { %v116_v56 = vperm.slane %v84_v48, %v105_v50  ;;  %v115_v58 = vsel %vm103_vm1, %v114_v49, %v113_v52 }
  0x8a   :  { %v104_v61 = vsel %vm103_vm1, %v102_v51, %v100_v55 }
  0x8b   :  { %v117_v8 = vsel %vm107_vm2, %v116_v56, %v115_v58  ;;  %v108_v15 = vsel %vm107_vm2, %v106_v63, %v104_v61 }
  0x8c   :  { %v70_v57 = vpop.xlane.xlu1 %69 }
  0x8d   :  { %v85_v59 = vmul.f32 %v77_v39, %v70_v57  ;;  %v58_v60 = vpop.xlane.xlu0 %57 }
  0x8e   :  { %v81_v62 = vmul.f32 %v77_v39, %v58_v60 }
  0x8f   :  { %v118_v3 = vperm.slane %v85_v59, %v109_v54 }
  0x90   :  { %v110_v7 = vperm.slane %v81_v62, %v109_v54 }
  0x91   :  { %v119_v16 = vsel %vm111_vm3, %v118_v3, %v117_v8 }
  0x92   :  { %v112_v17 = vsel %vm111_vm3, %v110_v7, %v108_v15 }
  0x93   :  { %v121_v22 = vsel %vm120_vm4, %v119_v16, %v112_v17 }
  0x94   :  { %296 = vmatmul.msk.f32.vlgmr.msra.gmra.mxu0 %vm122_vm5, %v121_v22 }
 0x111   :  { %v142_v24 = vpop.f32.mrf.mxu0 }
 0x112   :  { %v145_v25 = vmax.f32 %v142_v24, 0.0 }
 0x114   :  { %298 = vmatmul.msk.f32.vlgmr.msra.gmra.mxu1 %vm147_vm7, %v145_v25 }
 0x191   :  { %v172_v29 = vpop.f32.mrf.mxu1 }
 0x192   :  { %v299_v30 = vmul.f32 -1.442695, %v172_v29 }
 0x194   :  { %316 = vpow2.f32 %v299_v30 }
 0x19a   :  { %v317_v31 = vpop.eup %316 }
 0x19b   :  { %v178_v32 = vadd.f32 1.0, %v317_v31 }
 0x19d   :  { %318 = vrcp.f32 %v178_v32  ;;  %v190_v37 = vand.u32 2147483648, %v178_v32  ;;  %v188_v39 = vand.u32 2147483647, %v178_v32  ;;  %vm184_vm9 = vweird.f32 %v178_v32 }
 0x19f   :  { %v191_v40 = vor.u32 1.1754944e-38, %v190_v37  ;;  %vm189_vm11 = vcmp.eq.f32.partialorder %v188_v39, 8.507059e+37 }
 0x1a3   :  { %v319_v33 = vpop.eup %318 }
 0x1a4   :  { %v180_v34 = vmul.f32 %v319_v33, %v178_v32  ;;  %vm185_vm8 = vweird.f32 %v319_v33 }
 0x1a5   :  { %vm186_vm10 = vmor %vm184_vm9, %vm185_vm8 }
 0x1a6   :  { %v181_v35 = vsub.f32 1.0, %v180_v34 }
 0x1a8   :  { %v182_v38 = vmul.f32 %v319_v33, %v181_v35 }
 0x1aa   :  { %v183_v36 = vadd.f32 %v319_v33, %v182_v38 }
 0x1ac   :  { %v187_v41 = vsel %vm186_vm10, %v319_v33, %v183_v36 }
 0x1ad   :  { %v192_v42 = vsel %vm189_vm11, %v191_v40, %v187_v41 }
 0x1ae   :  { %v194_v43 = vadd.f32 1.0, %v192_v42 }
 0x1b0   :  { %v195_v44 = vperm.slane %v194_v43, 0  ;;  %v220_v46 = vperm.slane %v194_v43, 1 }
 0x1b2   :  { %212 = vperm.xlu1 %307, %v195_v44   ;;  %206 = vperm.xlu0 %306, %v195_v44  }
 0x1b3   :  { %200 = vperm.xlu2 %305, %v195_v44  }
 0x1ba   :  { %310 = vset.pattern.permute.xlu1 %v204_v28  ;;  %313 = vset.pattern.permute.xlu0 %v216_v45 }
 0x1bb   :  { %308 = vset.pattern.permute.xlu2 %v216_v45 }
 0x1c2   :  { %231 = vperm.xlu1 %310, %v220_v46  }
 0x1c3   :  { %218 = vperm.xlu2 %308, %v195_v44  }
 0x1ca   :  { %312 = vset.pattern.permute.xlu1 %v216_v45 }
 0x1cb   :  { %309 = vset.pattern.permute.xlu2 %v197_v26 }
 0x1d2   :  { %243 = vperm.xlu1 %312, %v220_v46  }
 0x1d3   :  { %225 = vperm.xlu2 %309, %v220_v46  }
 0x1db   :  { %311 = vset.pattern.permute.xlu2 %v210_v27 }
 0x1e3   :  { %237 = vperm.xlu2 %311, %v220_v46  }
 0x20d   :  { %v201_v47 = vpop.permute.xlu2 %200 }
 0x20e   :  { %v245_v48 = vmul.f32 %v201_v47, %v407_v2  ;;  %v246_v49 = vmul.f32 %v201_v47, %v411_v4 }
 0x210   :  { %261 = vst [vmem:[#allocation5] sm:$0xff] %v245_v48 }
 0x211   :  { %262 = vst [vmem:[#allocation5 + $0x8] sm:$0xff] %v246_v49 }
 0x21d   :  { %v219_v50 = vpop.permute.xlu2 %218 }
 0x21e   :  { %v251_v51 = vmul.f32 %v219_v50, %v443_v20  ;;  %v252_v52 = vmul.f32 %v219_v50, %v445_v21 }
 0x220   :  { %267 = vst [vmem:[#allocation5 + $0x30] sm:$0xff] %v251_v51 }
 0x221   :  { %268 = vst [vmem:[#allocation5 + $0x38] sm:$0xff] %v252_v52 }
 0x224   :  { %v213_v53 = vpop.permute.xlu1 %212  ;;  %v207_v54 = vpop.permute.xlu0 %206 }
 0x225   :  { %v249_v55 = vmul.f32 %v213_v53, %v413_v5  ;;  %v250_v56 = vmul.f32 %v213_v53, %v415_v6  ;;  %v247_v57 = vmul.f32 %v207_v54, %v425_v11  ;;  %v248_v2 = vmul.f32 %v207_v54, %v427_v12 }
 0x227   :  { %265 = vst [vmem:[#allocation5 + $0x20] sm:$0xff] %v249_v55 }
 0x228   :  { %266 = vst [vmem:[#allocation5 + $0x28] sm:$0xff] %v250_v56 }
 0x229   :  { %263 = vst [vmem:[#allocation5 + $0x10] sm:$0xff] %v247_v57 }
 0x22a   :  { %264 = vst [vmem:[#allocation5 + $0x18] sm:$0xff] %v248_v2 }
 0x22d   :  { %v226_v4 = vpop.permute.xlu2 %225 }
 0x22e   :  { %v253_v20 = vmul.f32 %v226_v4, %v403_v0  ;;  %v254_v21 = vmul.f32 %v226_v4, %v405_v1 }
 0x230   :  { %269 = vst [vmem:[#allocation5 + $0x40] sm:$0xff] %v253_v20 }
 0x231   :  { %270 = vst [vmem:[#allocation5 + $0x48] sm:$0xff] %v254_v21 }
 0x234   :  { %v232_v58 = vpop.permute.xlu1 %231 }
 0x235   :  { %v255_v5 = vmul.f32 %v232_v58, %v421_v9  ;;  %v256_v6 = vmul.f32 %v232_v58, %v423_v10 }
 0x237   :  { %271 = vst [vmem:[#allocation5 + $0x50] sm:$0xff] %v255_v5 }
 0x238   :  { %272 = vst [vmem:[#allocation5 + $0x58] sm:$0xff] %v256_v6 }
 0x23d   :  { %v238_v11 = vpop.permute.xlu2 %237 }
 0x23e   :  { %v257_v12 = vmul.f32 %v238_v11, %v429_v13  ;;  %v258_v59 = vmul.f32 %v238_v11, %v431_v14 }
 0x240   :  { %273 = vst [vmem:[#allocation5 + $0x60] sm:$0xff] %v257_v12 }
 0x241   :  { %274 = vst [vmem:[#allocation5 + $0x68] sm:$0xff] %v258_v59 }
 0x244   :  { %v244_v0 = vpop.permute.xlu1 %243 }
 0x245   :  { %v259_v1 = vmul.f32 %v244_v0, %v439_v18  ;;  %v260_v9 = vmul.f32 %v244_v0, %v441_v19 }
 0x247   :  { %275 = vst [vmem:[#allocation5 + $0x70] sm:$0xff] %v259_v1 }
 0x248   :  { %276 = vst [vmem:[#allocation5 + $0x78] sm:$0xff] %v260_v9 }
 0x249   :  { %289 = dma.vmem_to_hbm [thread:$0]  %s282_s27, 2048, %s284_s30, [#allocation4], %s373_s17, %s373_s17, %s374_s18  }
 0x24a   :  { %370 = dma.done.wait [#allocation4], 2048  }
 0x24b   :  { %371 = vsyncadd [#allocation4], 4294965248 }
 0x24c   :  { %294 = vsyncpa [#allocation3], 1 }
 0x24d   :  { %295 = vsyncpa [#allocation4], 1 }

</bundles_post_ra>
